<compile_context>
chip_gen: v5e
topology: v5e:2x2
jax: 0.10.0
libtpu: 0.0.40
codegen_flags: <defaults>
</compile_context>

<pallas_src>
import functools

import jax
import jax.numpy as jnp
from jax import lax
from jax.experimental import pallas as pl
from jax.experimental.pallas import tpu as pltpu

IGNORE_INDEX = 255
SMOOTH_FACTOR = 0.05   # SoftCrossEntropyLoss(smooth_factor=0.05)
DICE_SMOOTH = 0.05     # DiceLoss(smooth=0.05)
DICE_EPS = 1e-7

_MAX_TILE_ROWS = 4096  # rows of 128 pixels per grid step (<= 512K pixels / step)


def _vmem_params():
    """Generation-aware VMEM budgeting (v5e/v6e: 128 MiB physical, v7x: 64 MiB)."""
    cap = 64 << 20
    try:
        cap = int(pltpu.get_tpu_info().vmem_capacity_bytes)
    except Exception:
        pass
    budget = min(cap // 4, 24 << 20)   # double-buffered input tiles
    limit = min(cap // 2, 48 << 20)    # scoped VMEM limit handed to Mosaic
    return budget, limit


def _pick_tile_rows(rows, c, itemsize, budget):
    """Largest row-tile (multiple of 8, capped) whose double-buffered inputs fit."""
    per_row = 2 * 128 * (c * itemsize + 4)   # dbl-buffered logits + labels per 128-px row
    r = budget // per_row
    r = int(min(r, _MAX_TILE_ROWS, rows))
    r = max(8, (r // 8) * 8)
    return rows if r >= rows else r


# ----------------------------- Pallas kernel --------------------------------
def _seg_loss_kernel(lab_ref, logit_ref, ce_ref, *dice_out,
                     num_classes, tile_rows, tiles_per_split, total_rows,
                     ragged, ignore_index, with_dice):
    """One (batch, split, row-tile) grid step. Pixels on (sublane x lane).

      lab_ref   : (tile_rows, 128)       int32 labels
      logit_ref : (C, tile_rows, 128)    logits (producer dtype, upcast per chunk)
      ce_ref    : (16, 128)  f32 resident accumulator  (rows 0:8 = nll, 8:16 = smooth)
      dice_ref  : (3*C*8, 128) f32 resident accumulator (inter | prob-sum | target count)

    The tile is walked in (8, 128) chunks inside a fori_loop; all partial sums are
    carried in vregs and folded into the narrow VMEM accumulators once per tile.
    Cross-pixel reductions are finished in the JAX wrapper.
    """
    C = num_classes
    dice_ref = dice_out[0] if with_dice else None
    t = pl.program_id(2)

    @pl.when(t == 0)
    def _init():
        ce_ref[...] = jnp.zeros_like(ce_ref)
        if with_dice:
            dice_ref[...] = jnp.zeros_like(dice_ref)

    zero = jnp.zeros((8, 128), jnp.float32)

    def chunk(i, carry):
        off = pl.multiple_of(i * 8, 8)
        lab = lab_ref[pl.ds(off, 8), :]                      # (8, 128) int32
        valid = lab != ignore_index

        # class slabs: full-density (8,128) vreg ops (ignore_index never equals a class,
        # so (lab == c) is already a masked one-hot -> no extra select needed).
        xs = [logit_ref[c, pl.ds(off, 8), :].astype(jnp.float32) for c in range(C)]
        m = xs[0]
        for c in range(1, C):
            m = jnp.maximum(m, xs[c])

        se = zero
        zsum = zero
        zlab = zero
        ez = []
        for c in range(C):
            z = xs[c] - m
            e = jnp.exp(z)
            ez.append(e)
            se = se + e
            zsum = zsum + z
            zlab = zlab + jnp.where(lab == c, z, 0.0)
        logse = jnp.log(se)

        if with_dice:
            acc_nll, acc_sm, acc_int, acc_psm, acc_tsm = carry
        else:
            acc_nll, acc_sm = carry

        # selects (not multiplies) so ignored pixels contribute exactly 0
        acc_nll = acc_nll + jnp.where(valid, logse - zlab, 0.0)              # -logp[label]
        acc_sm = acc_sm + jnp.where(valid, float(C) * logse - zsum, 0.0)     # -sum_c logp[c]

        if not with_dice:
            return acc_nll, acc_sm

        inv = pl.reciprocal(se, approx=False)   # matches softmax within test tolerance
        new_int, new_psm, new_tsm = [], [], []
        for c in range(C):
            p = ez[c] * inv
            eq = lab == c
            new_int.append(acc_int[c] + jnp.where(eq, p, 0.0))       # intersection
            new_psm.append(acc_psm[c] + jnp.where(valid, p, 0.0))    # sum of probs (valid)
            new_tsm.append(acc_tsm[c] + eq.astype(jnp.float32))      # per-class target count
        return acc_nll, acc_sm, tuple(new_int), tuple(new_psm), tuple(new_tsm)

    if ragged:
        # Ragged last tile: skip whole garbage chunks via a dynamic trip count
        # (boundary is always on an 8-row chunk edge) -> zero per-element cost.
        row_base = (pl.program_id(1) * tiles_per_split + t) * tile_rows
        n_chunks = jnp.minimum(jnp.maximum(total_rows - row_base, 0) // 8, tile_rows // 8)
    else:
        n_chunks = tile_rows // 8

    if with_dice:
        init = (zero, zero, (zero,) * C, (zero,) * C, (zero,) * C)
    else:
        init = (zero, zero)

    res = lax.fori_loop(0, n_chunks, chunk, init)

    if with_dice:
        acc_nll, acc_sm, acc_int, acc_psm, acc_tsm = res
    else:
        acc_nll, acc_sm = res

    # One narrow fold per tile into the resident VMEM accumulators.
    ce_ref[pl.ds(0, 8), :] += acc_nll
    ce_ref[pl.ds(8, 8), :] += acc_sm
    if with_dice:
        for q, accs in enumerate((acc_int, acc_psm, acc_tsm)):
            for c in range(C):
                r0 = (q * C + c) * 8
                dice_ref[pl.ds(r0, 8), :] += accs[c]


def _loss_sums(logits_nchw, labels, *, with_dice, ignore_index=IGNORE_INDEX):
    """Run the Pallas kernel over all pixels; return accumulated sums."""
    n, c, h, w = logits_nchw.shape
    hw = h * w
    npix = n * hw

    x = logits_nchw.reshape(n, c, hw)
    lab = labels.reshape(n, hw).astype(jnp.int32)

    # Pad the pixel axis to a multiple of 8*128 so pixels map cleanly onto
    # (sublane, lane) tiles. Padded labels carry ignore_index -> contribute 0.
    # Common segmentation shapes (H*W % 1024 == 0) take the copy-free path.
    hw_p = ((hw + 1023) // 1024) * 1024
    if hw_p != hw:
        # TODO(synk): this pads (copies) logits once for odd H*W; an in-kernel
        # last-tile lane mask would avoid the copy.
        x = jnp.pad(x, ((0, 0), (0, 0), (0, hw_p - hw)))
        lab = jnp.pad(lab, ((0, 0), (0, hw_p - hw)), constant_values=ignore_index)
    rows = hw_p // 128
    x = x.reshape(n, c, rows, 128)      # free reshape (contiguous), no transpose/cast
    lab = lab.reshape(n, rows, 128)

    budget, vmem_limit = _vmem_params()
    tile_rows = _pick_tile_rows(rows, c, x.dtype.itemsize, budget)
    tiles = pl.cdiv(rows, tile_rows)
    ragged = (rows % tile_rows) != 0
    # 2-way spatial split -> megacore sharding on v7x even at batch 1; no-op cost
    # on single-TC chips. Only used when the tile count splits evenly.
    n_split = 2 if (tiles >= 2 and tiles % 2 == 0) else 1
    tiles_per_split = tiles // n_split

    kernel = functools.partial(
        _seg_loss_kernel, num_classes=c, tile_rows=tile_rows,
        tiles_per_split=tiles_per_split, total_rows=rows,
        ragged=ragged, ignore_index=ignore_index, with_dice=with_dice)

    lab_spec = pl.BlockSpec((None, tile_rows, 128),
                            lambda b, s, t: (b, s * tiles_per_split + t, 0))
    x_spec = pl.BlockSpec((None, c, tile_rows, 128),
                          lambda b, s, t: (b, 0, s * tiles_per_split + t, 0))
    ce_spec = pl.BlockSpec((None, None, 16, 128), lambda b, s, t: (b, s, 0, 0))
    ce_shape = jax.ShapeDtypeStruct((n, n_split, 16, 128), jnp.float32)

    if with_dice:
        dice_rows = 3 * c * 8
        dice_spec = pl.BlockSpec((None, None, dice_rows, 128),
                                 lambda b, s, t: (b, s, 0, 0))
        dice_shape = jax.ShapeDtypeStruct((n, n_split, dice_rows, 128), jnp.float32)
        out_shape = (ce_shape, dice_shape)
        out_specs = (ce_spec, dice_spec)
        out_bytes = n * n_split * (16 + dice_rows) * 128 * 4
    else:
        out_shape = ce_shape
        out_specs = ce_spec
        out_bytes = n * n_split * 16 * 128 * 4

    cost = pl.CostEstimate(
        flops=int(n * hw_p * (c * 16 + 12)),
        transcendentals=int(n * hw_p * (c + 2)),
        bytes_accessed=int(n * hw_p * (c * x.dtype.itemsize + 4) + out_bytes),
    )

    out = pl.pallas_call(
        kernel,
        out_shape=out_shape,
        grid_spec=pltpu.PrefetchScalarGridSpec(
            num_scalar_prefetch=0,
            grid=(n, n_split, tiles_per_split),
            in_specs=[lab_spec, x_spec],
            out_specs=out_specs),
        compiler_params=pltpu.CompilerParams(
            dimension_semantics=("parallel", "parallel", "arbitrary"),
            vmem_limit_bytes=int(vmem_limit)),
        cost_estimate=cost,
    )(lab, x)

    if with_dice:
        ce_p, dice_p = out
    else:
        ce_p = out

    # Tiny wrapper-side collapse of the narrow partial sums.
    nll_sum = jnp.sum(ce_p[:, :, 0:8, :])
    sm_sum = jnp.sum(ce_p[:, :, 8:16, :])
    if not with_dice:
        return (nll_sum, sm_sum, None), npix, c

    d = dice_p.reshape(n, n_split, 3, c, 8, 128)
    inter = jnp.sum(d[:, :, 0], axis=(0, 1, 3, 4))
    psum = jnp.sum(d[:, :, 1], axis=(0, 1, 3, 4))
    tsum = jnp.sum(d[:, :, 2], axis=(0, 1, 3, 4))
    return (nll_sum, sm_sum, (inter, psum, tsum)), npix, c


# ----------------------------- loss wrappers ---------------------------------
def soft_ce_loss(logits, labels):
    (nll_s, sm_s, _), npix, c = _loss_sums(logits, labels, with_dice=False)
    # NOTE: mean over ALL pixels (including ignore_index ones) — matches
    # pytorch_toolbelt's label_smoothed_nll_loss (masked_fill + .mean()).
    return (1.0 - SMOOTH_FACTOR) * (nll_s / npix) + (SMOOTH_FACTOR / c) * (sm_s / npix)


def main_loss(logits, labels):
    (nll_s, sm_s, dice_sums), npix, c = _loss_sums(logits, labels, with_dice=True)
    ce = (1.0 - SMOOTH_FACTOR) * (nll_s / npix) + (SMOOTH_FACTOR / c) * (sm_s / npix)
    inter, psum, tsum = dice_sums
    card = psum + tsum   # cardinality reconstructed in the wrapper (one add per class)
    score = (2.0 * inter + DICE_SMOOTH) / jnp.maximum(card + DICE_SMOOTH, DICE_EPS)
    dice = jnp.mean((1.0 - score) * (tsum > 0))
    return ce + dice     # JointLoss with weights 1.0, 1.0


def _bilinear_resize_align_false(img, out_h, out_w):
    """PyTorch F.interpolate(..., mode='bilinear', align_corners=False) on (N, H, W) float."""
    _, in_h, in_w = img.shape

    def src_idx(out_size, in_size):
        scale = in_size / out_size
        src = (jnp.arange(out_size, dtype=jnp.float32) + 0.5) * scale - 0.5
        src = jnp.maximum(src, 0.0)
        i0 = jnp.floor(src).astype(jnp.int32)
        i0 = jnp.minimum(i0, in_size - 1)
        i1 = jnp.minimum(i0 + 1, in_size - 1)
        frac = src - i0.astype(jnp.float32)
        return i0, i1, frac

    y0, y1, fy = src_idx(out_h, in_h)
    x0, x1, fx = src_idx(out_w, in_w)
    rows = img[:, y0, :] * (1.0 - fy)[None, :, None] + img[:, y1, :] * fy[None, :, None]
    out = rows[:, :, x0] * (1.0 - fx)[None, None, :] + rows[:, :, x1] * fx[None, None, :]
    return out


def ftbaformer_loss(logits, labels, training=True):
    """FTBAFormerLoss.forward"""
    if training and isinstance(logits, (tuple, list)) and len(logits) == 2:
        logit_main, logit_edge = logits
        loss1 = main_loss(logit_main, labels)
        h, w = logit_edge.shape[-2:]
        # Same as the PyTorch module: bilinear-resize the (float-cast) labels then
        # truncate back to int. (If labels contain ignore_index=255 this mixes it
        # with class ids near boundaries — faithful to the original module.)
        edge_labels = _bilinear_resize_align_false(labels.astype(jnp.float32), h, w)
        edge_labels = edge_labels.astype(jnp.int32)
        loss2 = soft_ce_loss(logit_edge, edge_labels)
        return loss1 + loss2
    return main_loss(logits, labels)


# ----------------------------- pure-JAX reference ----------------------------
def _ref_soft_ce(logits, labels, eps=SMOOTH_FACTOR, ignore=IGNORE_INDEX):
    logp = jax.nn.log_softmax(logits.astype(jnp.float32), axis=1)
    c = logits.shape[1]
    valid = labels != ignore
    lab0 = jnp.where(valid, labels, 0)
    nll = -jnp.take_along_axis(logp, lab0[:, None], axis=1)[:, 0]
    nll = jnp.where(valid, nll, 0.0)
    smooth = jnp.where(valid, -jnp.sum(logp, axis=1), 0.0)
    return (1.0 - eps) * nll.mean() + (eps / c) * smooth.mean()


def _ref_dice(logits, labels, smooth=DICE_SMOOTH, eps=DICE_EPS, ignore=IGNORE_INDEX):
    n, c, _, _ = logits.shape
    prob = jax.nn.softmax(logits.astype(jnp.float32), axis=1).reshape(n, c, -1)
    lab = labels.reshape(n, -1)
    mask = (lab != ignore).astype(jnp.float32)
    prob = prob * mask[:, None, :]
    onehot = jax.nn.one_hot(jnp.where(lab != ignore, lab, 0), c).transpose(0, 2, 1) * mask[:, None, :]
    inter = jnp.sum(prob * onehot, axis=(0, 2))
    card = jnp.sum(prob + onehot, axis=(0, 2))
    score = (2.0 * inter + smooth) / jnp.maximum(card + smooth, eps)
    return jnp.mean((1.0 - score) * (jnp.sum(onehot, axis=(0, 2)) > 0))


def _ref_ftbaformer(logits, labels):
    logit_main, logit_edge = logits
    loss1 = _ref_soft_ce(logit_main, labels) + _ref_dice(logit_main, labels)
    h, w = logit_edge.shape[-2:]
    edge_labels = _bilinear_resize_align_false(labels.astype(jnp.float32), h, w).astype(jnp.int32)
    loss2 = _ref_soft_ce(logit_edge, edge_labels)
    return loss1 + loss2


# ---------------------------------- main --------------------------------------
if __name__ == "__main__":
    key = jax.random.PRNGKey(0)
    k1, k2, k3 = jax.random.split(key, 3)

    N, C, H, W = 2, 4, 16, 16
    He, We = 8, 8  # edge head spatial size

    logit_main = jax.random.normal(k1, (N, C, H, W), dtype=jnp.float32)
    logit_edge = jax.random.normal(k2, (N, C, He, We), dtype=jnp.float32)
    # ignore_index masking is implemented in-kernel; demo labels stay in-range so the
    # bilinear-resized edge labels remain valid class indices (as PyTorch requires).
    labels = jax.random.randint(k3, (N, H, W), 0, C, dtype=jnp.int32)

    loss = ftbaformer_loss((logit_main, logit_edge), labels, training=True)
    loss = jax.block_until_ready(loss)

    ref = jax.block_until_ready(_ref_ftbaformer((logit_main, logit_edge), labels))
    assert jnp.allclose(loss, ref, rtol=1e-4, atol=1e-5), (loss, ref)

    print("KERNEL_OK")
</pallas_src>

<mosaic_0001>
module attributes {stable_mosaic.version = 11 : i64} {
  func.func @_seg_loss_kernel(%arg0: i32, %arg1: i32, %arg2: i32, %arg3: memref<1x8x128xi32, #tpu.memory_space<vmem>>, %arg4: memref<1x4x8x128xf32, #tpu.memory_space<vmem>>, %arg5: memref<1x1x16x128xf32, #tpu.memory_space<vmem>>, %arg6: memref<1x1x96x128xf32, #tpu.memory_space<vmem>>) attributes {dimension_semantics = [#tpu.dimension_semantics<parallel>, #tpu.dimension_semantics<parallel>, #tpu.dimension_semantics<arbitrary>], iteration_bounds = array<i64: 2, 1, 1>, scalar_prefetch = 0 : i64, scratch_operands = 0 : i64, tpu.core_type = #tpu.core_type<tc>, window_params = [{transform_indices = @transform_0, window_bounds = array<i64: 1, 8, 128>}, {transform_indices = @transform_1, window_bounds = array<i64: 1, 4, 8, 128>}, {transform_indices = @transform_2, window_bounds = array<i64: 1, 1, 16, 128>}, {transform_indices = @transform_3, window_bounds = array<i64: 1, 1, 96, 128>}]} {
    %c0_i32 = arith.constant 0 : i32
    %0 = arith.cmpi eq, %arg2, %c0_i32 : i32
    %1 = arith.extui %0 : i1 to i32
    %c0_i32_0 = arith.constant 0 : i32
    %2 = arith.cmpi ne, %1, %c0_i32_0 : i32
    scf.if %2 {
      %cst_134 = arith.constant 0.000000e+00 : f32
      %206 = vector.broadcast %cst_134 : f32 to vector<16x128xf32>
      %c0_135 = arith.constant 0 : index
      %c0_136 = arith.constant 0 : index
      %c0_137 = arith.constant 0 : index
      %c0_138 = arith.constant 0 : index
      %207 = vector.load %arg5[%c0_135, %c0_136, %c0_137, %c0_138] : memref<1x1x16x128xf32, #tpu.memory_space<vmem>>, vector<1x1x16x128xf32>
      %208 = vector.shape_cast %207 : vector<1x1x16x128xf32> to vector<16x128xf32>
      %209 = vector.shape_cast %206 : vector<16x128xf32> to vector<1x1x16x128xf32>
      tpu.vector_store %arg5[%c0_135, %c0_136, %c0_137, %c0_138], %209 {strides = array<i32>} : memref<1x1x16x128xf32, #tpu.memory_space<vmem>>, vector<1x1x16x128xf32>,
      %cst_139 = arith.constant 0.000000e+00 : f32
      %210 = vector.broadcast %cst_139 : f32 to vector<96x128xf32>
      %c0_140 = arith.constant 0 : index
      %c0_141 = arith.constant 0 : index
      %c0_142 = arith.constant 0 : index
      %c0_143 = arith.constant 0 : index
      %211 = vector.load %arg6[%c0_140, %c0_141, %c0_142, %c0_143] : memref<1x1x96x128xf32, #tpu.memory_space<vmem>>, vector<1x1x96x128xf32>
      %212 = vector.shape_cast %211 : vector<1x1x96x128xf32> to vector<96x128xf32>
      %213 = vector.shape_cast %210 : vector<96x128xf32> to vector<1x1x96x128xf32>
      tpu.vector_store %arg6[%c0_140, %c0_141, %c0_142, %c0_143], %213 {strides = array<i32>} : memref<1x1x96x128xf32, #tpu.memory_space<vmem>>, vector<1x1x96x128xf32>,
    } else {
    }
    %cst = arith.constant 0.000000e+00 : f32
    %3 = vector.broadcast %cst : f32 to vector<8x128xf32>
    %c0_i32_1 = arith.constant 0 : i32
    %c8_i32 = arith.constant 8 : i32
    %4 = arith.muli %c0_i32_1, %c8_i32 : i32
    %5 = tpu.assume_multiple %4, 8 : i32
    %c0 = arith.constant 0 : index
    %6 = arith.index_cast %5 : i32 to index
    %c0_2 = arith.constant 0 : index
    %7 = vector.load %arg3[%c0, %6, %c0_2] : memref<1x8x128xi32, #tpu.memory_space<vmem>>, vector<1x8x128xi32>
    %8 = vector.shape_cast %7 : vector<1x8x128xi32> to vector<8x128xi32>
    %c255_i32 = arith.constant 255 : i32
    %9 = vector.broadcast %c255_i32 : i32 to vector<8x128xi32>
    %10 = arith.cmpi ne, %8, %9 : vector<8x128xi32>
    %c0_3 = arith.constant 0 : index
    %c0_4 = arith.constant 0 : index
    %11 = arith.index_cast %5 : i32 to index
    %c0_5 = arith.constant 0 : index
    %12 = vector.load %arg4[%c0_3, %c0_4, %11, %c0_5] : memref<1x4x8x128xf32, #tpu.memory_space<vmem>>, vector<1x1x8x128xf32>
    %13 = vector.shape_cast %12 : vector<1x1x8x128xf32> to vector<8x128xf32>
    %c0_6 = arith.constant 0 : index
    %c1 = arith.constant 1 : index
    %14 = arith.index_cast %5 : i32 to index
    %c0_7 = arith.constant 0 : index
    %15 = vector.load %arg4[%c0_6, %c1, %14, %c0_7] : memref<1x4x8x128xf32, #tpu.memory_space<vmem>>, vector<1x1x8x128xf32>
    %16 = vector.shape_cast %15 : vector<1x1x8x128xf32> to vector<8x128xf32>
    %c0_8 = arith.constant 0 : index
    %c2 = arith.constant 2 : index
    %17 = arith.index_cast %5 : i32 to index
    %c0_9 = arith.constant 0 : index
    %18 = vector.load %arg4[%c0_8, %c2, %17, %c0_9] : memref<1x4x8x128xf32, #tpu.memory_space<vmem>>, vector<1x1x8x128xf32>
    %19 = vector.shape_cast %18 : vector<1x1x8x128xf32> to vector<8x128xf32>
    %c0_10 = arith.constant 0 : index
    %c3 = arith.constant 3 : index
    %20 = arith.index_cast %5 : i32 to index
    %c0_11 = arith.constant 0 : index
    %21 = vector.load %arg4[%c0_10, %c3, %20, %c0_11] : memref<1x4x8x128xf32, #tpu.memory_space<vmem>>, vector<1x1x8x128xf32>
    %22 = vector.shape_cast %21 : vector<1x1x8x128xf32> to vector<8x128xf32>
    %23 = arith.maximumf %13, %16 : vector<8x128xf32>
    %24 = arith.maximumf %23, %19 : vector<8x128xf32>
    %25 = arith.maximumf %24, %22 : vector<8x128xf32>
    %26 = arith.subf %13, %25 : vector<8x128xf32>
    %27 = math.exp %26 : vector<8x128xf32>
    %28 = arith.addf %3, %27 : vector<8x128xf32>
    %29 = arith.addf %3, %26 : vector<8x128xf32>
    %c0_i32_12 = arith.constant 0 : i32
    %30 = vector.broadcast %c0_i32_12 : i32 to vector<8x128xi32>
    %31 = arith.cmpi eq, %8, %30 : vector<8x128xi32>
    %cst_13 = arith.constant 0.000000e+00 : f32
    %32 = vector.broadcast %cst_13 : f32 to vector<8x128xf32>
    %33 = arith.select %31, %26, %32 : vector<8x128xi1>, vector<8x128xf32>
    %34 = arith.addf %3, %33 : vector<8x128xf32>
    %35 = arith.subf %16, %25 : vector<8x128xf32>
    %36 = math.exp %35 : vector<8x128xf32>
    %37 = arith.addf %28, %36 : vector<8x128xf32>
    %38 = arith.addf %29, %35 : vector<8x128xf32>
    %c1_i32 = arith.constant 1 : i32
    %39 = vector.broadcast %c1_i32 : i32 to vector<8x128xi32>
    %40 = arith.cmpi eq, %8, %39 : vector<8x128xi32>
    %cst_14 = arith.constant 0.000000e+00 : f32
    %41 = vector.broadcast %cst_14 : f32 to vector<8x128xf32>
    %42 = arith.select %40, %35, %41 : vector<8x128xi1>, vector<8x128xf32>
    %43 = arith.addf %34, %42 : vector<8x128xf32>
    %44 = arith.subf %19, %25 : vector<8x128xf32>
    %45 = math.exp %44 : vector<8x128xf32>
    %46 = arith.addf %37, %45 : vector<8x128xf32>
    %47 = arith.addf %38, %44 : vector<8x128xf32>
    %c2_i32 = arith.constant 2 : i32
    %48 = vector.broadcast %c2_i32 : i32 to vector<8x128xi32>
    %49 = arith.cmpi eq, %8, %48 : vector<8x128xi32>
    %cst_15 = arith.constant 0.000000e+00 : f32
    %50 = vector.broadcast %cst_15 : f32 to vector<8x128xf32>
    %51 = arith.select %49, %44, %50 : vector<8x128xi1>, vector<8x128xf32>
    %52 = arith.addf %43, %51 : vector<8x128xf32>
    %53 = arith.subf %22, %25 : vector<8x128xf32>
    %54 = math.exp %53 : vector<8x128xf32>
    %55 = arith.addf %46, %54 : vector<8x128xf32>
    %56 = arith.addf %47, %53 : vector<8x128xf32>
    %c3_i32 = arith.constant 3 : i32
    %57 = vector.broadcast %c3_i32 : i32 to vector<8x128xi32>
    %58 = arith.cmpi eq, %8, %57 : vector<8x128xi32>
    %cst_16 = arith.constant 0.000000e+00 : f32
    %59 = vector.broadcast %cst_16 : f32 to vector<8x128xf32>
    %60 = arith.select %58, %53, %59 : vector<8x128xi1>, vector<8x128xf32>
    %61 = arith.addf %52, %60 : vector<8x128xf32>
    %62 = math.log %55 : vector<8x128xf32>
    %63 = arith.subf %62, %61 : vector<8x128xf32>
    %cst_17 = arith.constant 0.000000e+00 : f32
    %64 = vector.broadcast %cst_17 : f32 to vector<8x128xf32>
    %65 = arith.select %10, %63, %64 : vector<8x128xi1>, vector<8x128xf32>
    %66 = arith.addf %3, %65 : vector<8x128xf32>
    %cst_18 = arith.constant 4.000000e+00 : f32
    %67 = vector.broadcast %cst_18 : f32 to vector<8x128xf32>
    %68 = arith.mulf %67, %62 : vector<8x128xf32>
    %69 = arith.subf %68, %56 : vector<8x128xf32>
    %cst_19 = arith.constant 0.000000e+00 : f32
    %70 = vector.broadcast %cst_19 : f32 to vector<8x128xf32>
    %71 = arith.select %10, %69, %70 : vector<8x128xi1>, vector<8x128xf32>
    %72 = arith.addf %3, %71 : vector<8x128xf32>
    %73 = tpu.reciprocal %55 : vector<8x128xf32> -> vector<8x128xf32>
    %74 = arith.mulf %27, %73 : vector<8x128xf32>
    %c0_i32_20 = arith.constant 0 : i32
    %75 = vector.broadcast %c0_i32_20 : i32 to vector<8x128xi32>
    %76 = arith.cmpi eq, %8, %75 : vector<8x128xi32>
    %cst_21 = arith.constant 0.000000e+00 : f32
    %77 = vector.broadcast %cst_21 : f32 to vector<8x128xf32>
    %78 = arith.select %76, %74, %77 : vector<8x128xi1>, vector<8x128xf32>
    %79 = arith.addf %3, %78 : vector<8x128xf32>
    %cst_22 = arith.constant 0.000000e+00 : f32
    %80 = vector.broadcast %cst_22 : f32 to vector<8x128xf32>
    %81 = arith.select %10, %74, %80 : vector<8x128xi1>, vector<8x128xf32>
    %82 = arith.addf %3, %81 : vector<8x128xf32>
    %83 = arith.extui %76 : vector<8x128xi1> to vector<8x128xi32>
    %84 = arith.sitofp %83 : vector<8x128xi32> to vector<8x128xf32>
    %85 = arith.addf %3, %84 : vector<8x128xf32>
    %86 = arith.mulf %36, %73 : vector<8x128xf32>
    %c1_i32_23 = arith.constant 1 : i32
    %87 = vector.broadcast %c1_i32_23 : i32 to vector<8x128xi32>
    %88 = arith.cmpi eq, %8, %87 : vector<8x128xi32>
    %cst_24 = arith.constant 0.000000e+00 : f32
    %89 = vector.broadcast %cst_24 : f32 to vector<8x128xf32>
    %90 = arith.select %88, %86, %89 : vector<8x128xi1>, vector<8x128xf32>
    %91 = arith.addf %3, %90 : vector<8x128xf32>
    %cst_25 = arith.constant 0.000000e+00 : f32
    %92 = vector.broadcast %cst_25 : f32 to vector<8x128xf32>
    %93 = arith.select %10, %86, %92 : vector<8x128xi1>, vector<8x128xf32>
    %94 = arith.addf %3, %93 : vector<8x128xf32>
    %95 = arith.extui %88 : vector<8x128xi1> to vector<8x128xi32>
    %96 = arith.sitofp %95 : vector<8x128xi32> to vector<8x128xf32>
    %97 = arith.addf %3, %96 : vector<8x128xf32>
    %98 = arith.mulf %45, %73 : vector<8x128xf32>
    %c2_i32_26 = arith.constant 2 : i32
    %99 = vector.broadcast %c2_i32_26 : i32 to vector<8x128xi32>
    %100 = arith.cmpi eq, %8, %99 : vector<8x128xi32>
    %cst_27 = arith.constant 0.000000e+00 : f32
    %101 = vector.broadcast %cst_27 : f32 to vector<8x128xf32>
    %102 = arith.select %100, %98, %101 : vector<8x128xi1>, vector<8x128xf32>
    %103 = arith.addf %3, %102 : vector<8x128xf32>
    %cst_28 = arith.constant 0.000000e+00 : f32
    %104 = vector.broadcast %cst_28 : f32 to vector<8x128xf32>
    %105 = arith.select %10, %98, %104 : vector<8x128xi1>, vector<8x128xf32>
    %106 = arith.addf %3, %105 : vector<8x128xf32>
    %107 = arith.extui %100 : vector<8x128xi1> to vector<8x128xi32>
    %108 = arith.sitofp %107 : vector<8x128xi32> to vector<8x128xf32>
    %109 = arith.addf %3, %108 : vector<8x128xf32>
    %110 = arith.mulf %54, %73 : vector<8x128xf32>
    %c3_i32_29 = arith.constant 3 : i32
    %111 = vector.broadcast %c3_i32_29 : i32 to vector<8x128xi32>
    %112 = arith.cmpi eq, %8, %111 : vector<8x128xi32>
    %cst_30 = arith.constant 0.000000e+00 : f32
    %113 = vector.broadcast %cst_30 : f32 to vector<8x128xf32>
    %114 = arith.select %112, %110, %113 : vector<8x128xi1>, vector<8x128xf32>
    %115 = arith.addf %3, %114 : vector<8x128xf32>
    %cst_31 = arith.constant 0.000000e+00 : f32
    %116 = vector.broadcast %cst_31 : f32 to vector<8x128xf32>
    %117 = arith.select %10, %110, %116 : vector<8x128xi1>, vector<8x128xf32>
    %118 = arith.addf %3, %117 : vector<8x128xf32>
    %119 = arith.extui %112 : vector<8x128xi1> to vector<8x128xi32>
    %120 = arith.sitofp %119 : vector<8x128xi32> to vector<8x128xf32>
    %121 = arith.addf %3, %120 : vector<8x128xf32>
    %c1_i32_32 = arith.constant 1 : i32
    %c0_33 = arith.constant 0 : index
    %c0_34 = arith.constant 0 : index
    %c0_35 = arith.constant 0 : index
    %c0_36 = arith.constant 0 : index
    %122 = vector.load %arg5[%c0_33, %c0_34, %c0_35, %c0_36] : memref<1x1x16x128xf32, #tpu.memory_space<vmem>>, vector<1x1x8x128xf32>
    %123 = vector.shape_cast %122 : vector<1x1x8x128xf32> to vector<8x128xf32>
    %124 = arith.addf %123, %66 : vector<8x128xf32>
    %c0_37 = arith.constant 0 : index
    %c0_38 = arith.constant 0 : index
    %c0_39 = arith.constant 0 : index
    %c0_40 = arith.constant 0 : index
    %125 = vector.load %arg5[%c0_37, %c0_38, %c0_39, %c0_40] : memref<1x1x16x128xf32, #tpu.memory_space<vmem>>, vector<1x1x8x128xf32>
    %126 = vector.shape_cast %125 : vector<1x1x8x128xf32> to vector<8x128xf32>
    %127 = vector.shape_cast %124 : vector<8x128xf32> to vector<1x1x8x128xf32>
    tpu.vector_store %arg5[%c0_37, %c0_38, %c0_39, %c0_40], %127 {strides = array<i32>} : memref<1x1x16x128xf32, #tpu.memory_space<vmem>>, vector<1x1x8x128xf32>,
    %c0_41 = arith.constant 0 : index
    %c0_42 = arith.constant 0 : index
    %c8 = arith.constant 8 : index
    %c0_43 = arith.constant 0 : index
    %128 = vector.load %arg5[%c0_41, %c0_42, %c8, %c0_43] : memref<1x1x16x128xf32, #tpu.memory_space<vmem>>, vector<1x1x8x128xf32>
    %129 = vector.shape_cast %128 : vector<1x1x8x128xf32> to vector<8x128xf32>
    %130 = arith.addf %129, %72 : vector<8x128xf32>
    %c0_44 = arith.constant 0 : index
    %c0_45 = arith.constant 0 : index
    %c8_46 = arith.constant 8 : index
    %c0_47 = arith.constant 0 : index
    %131 = vector.load %arg5[%c0_44, %c0_45, %c8_46, %c0_47] : memref<1x1x16x128xf32, #tpu.memory_space<vmem>>, vector<1x1x8x128xf32>
    %132 = vector.shape_cast %131 : vector<1x1x8x128xf32> to vector<8x128xf32>
    %133 = vector.shape_cast %130 : vector<8x128xf32> to vector<1x1x8x128xf32>
    tpu.vector_store %arg5[%c0_44, %c0_45, %c8_46, %c0_47], %133 {strides = array<i32>} : memref<1x1x16x128xf32, #tpu.memory_space<vmem>>, vector<1x1x8x128xf32>,
    %c0_48 = arith.constant 0 : index
    %c0_49 = arith.constant 0 : index
    %c0_50 = arith.constant 0 : index
    %c0_51 = arith.constant 0 : index
    %134 = vector.load %arg6[%c0_48, %c0_49, %c0_50, %c0_51] : memref<1x1x96x128xf32, #tpu.memory_space<vmem>>, vector<1x1x8x128xf32>
    %135 = vector.shape_cast %134 : vector<1x1x8x128xf32> to vector<8x128xf32>
    %136 = arith.addf %135, %79 : vector<8x128xf32>
    %c0_52 = arith.constant 0 : index
    %c0_53 = arith.constant 0 : index
    %c0_54 = arith.constant 0 : index
    %c0_55 = arith.constant 0 : index
    %137 = vector.load %arg6[%c0_52, %c0_53, %c0_54, %c0_55] : memref<1x1x96x128xf32, #tpu.memory_space<vmem>>, vector<1x1x8x128xf32>
    %138 = vector.shape_cast %137 : vector<1x1x8x128xf32> to vector<8x128xf32>
    %139 = vector.shape_cast %136 : vector<8x128xf32> to vector<1x1x8x128xf32>
    tpu.vector_store %arg6[%c0_52, %c0_53, %c0_54, %c0_55], %139 {strides = array<i32>} : memref<1x1x96x128xf32, #tpu.memory_space<vmem>>, vector<1x1x8x128xf32>,
    %c0_56 = arith.constant 0 : index
    %c0_57 = arith.constant 0 : index
    %c8_58 = arith.constant 8 : index
    %c0_59 = arith.constant 0 : index
    %140 = vector.load %arg6[%c0_56, %c0_57, %c8_58, %c0_59] : memref<1x1x96x128xf32, #tpu.memory_space<vmem>>, vector<1x1x8x128xf32>
    %141 = vector.shape_cast %140 : vector<1x1x8x128xf32> to vector<8x128xf32>
    %142 = arith.addf %141, %91 : vector<8x128xf32>
    %c0_60 = arith.constant 0 : index
    %c0_61 = arith.constant 0 : index
    %c8_62 = arith.constant 8 : index
    %c0_63 = arith.constant 0 : index
    %143 = vector.load %arg6[%c0_60, %c0_61, %c8_62, %c0_63] : memref<1x1x96x128xf32, #tpu.memory_space<vmem>>, vector<1x1x8x128xf32>
    %144 = vector.shape_cast %143 : vector<1x1x8x128xf32> to vector<8x128xf32>
    %145 = vector.shape_cast %142 : vector<8x128xf32> to vector<1x1x8x128xf32>
    tpu.vector_store %arg6[%c0_60, %c0_61, %c8_62, %c0_63], %145 {strides = array<i32>} : memref<1x1x96x128xf32, #tpu.memory_space<vmem>>, vector<1x1x8x128xf32>,
    %c0_64 = arith.constant 0 : index
    %c0_65 = arith.constant 0 : index
    %c16 = arith.constant 16 : index
    %c0_66 = arith.constant 0 : index
    %146 = vector.load %arg6[%c0_64, %c0_65, %c16, %c0_66] : memref<1x1x96x128xf32, #tpu.memory_space<vmem>>, vector<1x1x8x128xf32>
    %147 = vector.shape_cast %146 : vector<1x1x8x128xf32> to vector<8x128xf32>
    %148 = arith.addf %147, %103 : vector<8x128xf32>
    %c0_67 = arith.constant 0 : index
    %c0_68 = arith.constant 0 : index
    %c16_69 = arith.constant 16 : index
    %c0_70 = arith.constant 0 : index
    %149 = vector.load %arg6[%c0_67, %c0_68, %c16_69, %c0_70] : memref<1x1x96x128xf32, #tpu.memory_space<vmem>>, vector<1x1x8x128xf32>
    %150 = vector.shape_cast %149 : vector<1x1x8x128xf32> to vector<8x128xf32>
    %151 = vector.shape_cast %148 : vector<8x128xf32> to vector<1x1x8x128xf32>
    tpu.vector_store %arg6[%c0_67, %c0_68, %c16_69, %c0_70], %151 {strides = array<i32>} : memref<1x1x96x128xf32, #tpu.memory_space<vmem>>, vector<1x1x8x128xf32>,
    %c0_71 = arith.constant 0 : index
    %c0_72 = arith.constant 0 : index
    %c24 = arith.constant 24 : index
    %c0_73 = arith.constant 0 : index
    %152 = vector.load %arg6[%c0_71, %c0_72, %c24, %c0_73] : memref<1x1x96x128xf32, #tpu.memory_space<vmem>>, vector<1x1x8x128xf32>
    %153 = vector.shape_cast %152 : vector<1x1x8x128xf32> to vector<8x128xf32>
    %154 = arith.addf %153, %115 : vector<8x128xf32>
    %c0_74 = arith.constant 0 : index
    %c0_75 = arith.constant 0 : index
    %c24_76 = arith.constant 24 : index
    %c0_77 = arith.constant 0 : index
    %155 = vector.load %arg6[%c0_74, %c0_75, %c24_76, %c0_77] : memref<1x1x96x128xf32, #tpu.memory_space<vmem>>, vector<1x1x8x128xf32>
    %156 = vector.shape_cast %155 : vector<1x1x8x128xf32> to vector<8x128xf32>
    %157 = vector.shape_cast %154 : vector<8x128xf32> to vector<1x1x8x128xf32>
    tpu.vector_store %arg6[%c0_74, %c0_75, %c24_76, %c0_77], %157 {strides = array<i32>} : memref<1x1x96x128xf32, #tpu.memory_space<vmem>>, vector<1x1x8x128xf32>,
    %c0_78 = arith.constant 0 : index
    %c0_79 = arith.constant 0 : index
    %c32 = arith.constant 32 : index
    %c0_80 = arith.constant 0 : index
    %158 = vector.load %arg6[%c0_78, %c0_79, %c32, %c0_80] : memref<1x1x96x128xf32, #tpu.memory_space<vmem>>, vector<1x1x8x128xf32>
    %159 = vector.shape_cast %158 : vector<1x1x8x128xf32> to vector<8x128xf32>
    %160 = arith.addf %159, %82 : vector<8x128xf32>
    %c0_81 = arith.constant 0 : index
    %c0_82 = arith.constant 0 : index
    %c32_83 = arith.constant 32 : index
    %c0_84 = arith.constant 0 : index
    %161 = vector.load %arg6[%c0_81, %c0_82, %c32_83, %c0_84] : memref<1x1x96x128xf32, #tpu.memory_space<vmem>>, vector<1x1x8x128xf32>
    %162 = vector.shape_cast %161 : vector<1x1x8x128xf32> to vector<8x128xf32>
    %163 = vector.shape_cast %160 : vector<8x128xf32> to vector<1x1x8x128xf32>
    tpu.vector_store %arg6[%c0_81, %c0_82, %c32_83, %c0_84], %163 {strides = array<i32>} : memref<1x1x96x128xf32, #tpu.memory_space<vmem>>, vector<1x1x8x128xf32>,
    %c0_85 = arith.constant 0 : index
    %c0_86 = arith.constant 0 : index
    %c40 = arith.constant 40 : index
    %c0_87 = arith.constant 0 : index
    %164 = vector.load %arg6[%c0_85, %c0_86, %c40, %c0_87] : memref<1x1x96x128xf32, #tpu.memory_space<vmem>>, vector<1x1x8x128xf32>
    %165 = vector.shape_cast %164 : vector<1x1x8x128xf32> to vector<8x128xf32>
    %166 = arith.addf %165, %94 : vector<8x128xf32>
    %c0_88 = arith.constant 0 : index
    %c0_89 = arith.constant 0 : index
    %c40_90 = arith.constant 40 : index
    %c0_91 = arith.constant 0 : index
    %167 = vector.load %arg6[%c0_88, %c0_89, %c40_90, %c0_91] : memref<1x1x96x128xf32, #tpu.memory_space<vmem>>, vector<1x1x8x128xf32>
    %168 = vector.shape_cast %167 : vector<1x1x8x128xf32> to vector<8x128xf32>
    %169 = vector.shape_cast %166 : vector<8x128xf32> to vector<1x1x8x128xf32>
    tpu.vector_store %arg6[%c0_88, %c0_89, %c40_90, %c0_91], %169 {strides = array<i32>} : memref<1x1x96x128xf32, #tpu.memory_space<vmem>>, vector<1x1x8x128xf32>,
    %c0_92 = arith.constant 0 : index
    %c0_93 = arith.constant 0 : index
    %c48 = arith.constant 48 : index
    %c0_94 = arith.constant 0 : index
    %170 = vector.load %arg6[%c0_92, %c0_93, %c48, %c0_94] : memref<1x1x96x128xf32, #tpu.memory_space<vmem>>, vector<1x1x8x128xf32>
    %171 = vector.shape_cast %170 : vector<1x1x8x128xf32> to vector<8x128xf32>
    %172 = arith.addf %171, %106 : vector<8x128xf32>
    %c0_95 = arith.constant 0 : index
    %c0_96 = arith.constant 0 : index
    %c48_97 = arith.constant 48 : index
    %c0_98 = arith.constant 0 : index
    %173 = vector.load %arg6[%c0_95, %c0_96, %c48_97, %c0_98] : memref<1x1x96x128xf32, #tpu.memory_space<vmem>>, vector<1x1x8x128xf32>
    %174 = vector.shape_cast %173 : vector<1x1x8x128xf32> to vector<8x128xf32>
    %175 = vector.shape_cast %172 : vector<8x128xf32> to vector<1x1x8x128xf32>
    tpu.vector_store %arg6[%c0_95, %c0_96, %c48_97, %c0_98], %175 {strides = array<i32>} : memref<1x1x96x128xf32, #tpu.memory_space<vmem>>, vector<1x1x8x128xf32>,
    %c0_99 = arith.constant 0 : index
    %c0_100 = arith.constant 0 : index
    %c56 = arith.constant 56 : index
    %c0_101 = arith.constant 0 : index
    %176 = vector.load %arg6[%c0_99, %c0_100, %c56, %c0_101] : memref<1x1x96x128xf32, #tpu.memory_space<vmem>>, vector<1x1x8x128xf32>
    %177 = vector.shape_cast %176 : vector<1x1x8x128xf32> to vector<8x128xf32>
    %178 = arith.addf %177, %118 : vector<8x128xf32>
    %c0_102 = arith.constant 0 : index
    %c0_103 = arith.constant 0 : index
    %c56_104 = arith.constant 56 : index
    %c0_105 = arith.constant 0 : index
    %179 = vector.load %arg6[%c0_102, %c0_103, %c56_104, %c0_105] : memref<1x1x96x128xf32, #tpu.memory_space<vmem>>, vector<1x1x8x128xf32>
    %180 = vector.shape_cast %179 : vector<1x1x8x128xf32> to vector<8x128xf32>
    %181 = vector.shape_cast %178 : vector<8x128xf32> to vector<1x1x8x128xf32>
    tpu.vector_store %arg6[%c0_102, %c0_103, %c56_104, %c0_105], %181 {strides = array<i32>} : memref<1x1x96x128xf32, #tpu.memory_space<vmem>>, vector<1x1x8x128xf32>,
    %c0_106 = arith.constant 0 : index
    %c0_107 = arith.constant 0 : index
    %c64 = arith.constant 64 : index
    %c0_108 = arith.constant 0 : index
    %182 = vector.load %arg6[%c0_106, %c0_107, %c64, %c0_108] : memref<1x1x96x128xf32, #tpu.memory_space<vmem>>, vector<1x1x8x128xf32>
    %183 = vector.shape_cast %182 : vector<1x1x8x128xf32> to vector<8x128xf32>
    %184 = arith.addf %183, %85 : vector<8x128xf32>
    %c0_109 = arith.constant 0 : index
    %c0_110 = arith.constant 0 : index
    %c64_111 = arith.constant 64 : index
    %c0_112 = arith.constant 0 : index
    %185 = vector.load %arg6[%c0_109, %c0_110, %c64_111, %c0_112] : memref<1x1x96x128xf32, #tpu.memory_space<vmem>>, vector<1x1x8x128xf32>
    %186 = vector.shape_cast %185 : vector<1x1x8x128xf32> to vector<8x128xf32>
    %187 = vector.shape_cast %184 : vector<8x128xf32> to vector<1x1x8x128xf32>
    tpu.vector_store %arg6[%c0_109, %c0_110, %c64_111, %c0_112], %187 {strides = array<i32>} : memref<1x1x96x128xf32, #tpu.memory_space<vmem>>, vector<1x1x8x128xf32>,
    %c0_113 = arith.constant 0 : index
    %c0_114 = arith.constant 0 : index
    %c72 = arith.constant 72 : index
    %c0_115 = arith.constant 0 : index
    %188 = vector.load %arg6[%c0_113, %c0_114, %c72, %c0_115] : memref<1x1x96x128xf32, #tpu.memory_space<vmem>>, vector<1x1x8x128xf32>
    %189 = vector.shape_cast %188 : vector<1x1x8x128xf32> to vector<8x128xf32>
    %190 = arith.addf %189, %97 : vector<8x128xf32>
    %c0_116 = arith.constant 0 : index
    %c0_117 = arith.constant 0 : index
    %c72_118 = arith.constant 72 : index
    %c0_119 = arith.constant 0 : index
    %191 = vector.load %arg6[%c0_116, %c0_117, %c72_118, %c0_119] : memref<1x1x96x128xf32, #tpu.memory_space<vmem>>, vector<1x1x8x128xf32>
    %192 = vector.shape_cast %191 : vector<1x1x8x128xf32> to vector<8x128xf32>
    %193 = vector.shape_cast %190 : vector<8x128xf32> to vector<1x1x8x128xf32>
    tpu.vector_store %arg6[%c0_116, %c0_117, %c72_118, %c0_119], %193 {strides = array<i32>} : memref<1x1x96x128xf32, #tpu.memory_space<vmem>>, vector<1x1x8x128xf32>,
    %c0_120 = arith.constant 0 : index
    %c0_121 = arith.constant 0 : index
    %c80 = arith.constant 80 : index
    %c0_122 = arith.constant 0 : index
    %194 = vector.load %arg6[%c0_120, %c0_121, %c80, %c0_122] : memref<1x1x96x128xf32, #tpu.memory_space<vmem>>, vector<1x1x8x128xf32>
    %195 = vector.shape_cast %194 : vector<1x1x8x128xf32> to vector<8x128xf32>
    %196 = arith.addf %195, %109 : vector<8x128xf32>
    %c0_123 = arith.constant 0 : index
    %c0_124 = arith.constant 0 : index
    %c80_125 = arith.constant 80 : index
    %c0_126 = arith.constant 0 : index
    %197 = vector.load %arg6[%c0_123, %c0_124, %c80_125, %c0_126] : memref<1x1x96x128xf32, #tpu.memory_space<vmem>>, vector<1x1x8x128xf32>
    %198 = vector.shape_cast %197 : vector<1x1x8x128xf32> to vector<8x128xf32>
    %199 = vector.shape_cast %196 : vector<8x128xf32> to vector<1x1x8x128xf32>
    tpu.vector_store %arg6[%c0_123, %c0_124, %c80_125, %c0_126], %199 {strides = array<i32>} : memref<1x1x96x128xf32, #tpu.memory_space<vmem>>, vector<1x1x8x128xf32>,
    %c0_127 = arith.constant 0 : index
    %c0_128 = arith.constant 0 : index
    %c88 = arith.constant 88 : index
    %c0_129 = arith.constant 0 : index
    %200 = vector.load %arg6[%c0_127, %c0_128, %c88, %c0_129] : memref<1x1x96x128xf32, #tpu.memory_space<vmem>>, vector<1x1x8x128xf32>
    %201 = vector.shape_cast %200 : vector<1x1x8x128xf32> to vector<8x128xf32>
    %202 = arith.addf %201, %121 : vector<8x128xf32>
    %c0_130 = arith.constant 0 : index
    %c0_131 = arith.constant 0 : index
    %c88_132 = arith.constant 88 : index
    %c0_133 = arith.constant 0 : index
    %203 = vector.load %arg6[%c0_130, %c0_131, %c88_132, %c0_133] : memref<1x1x96x128xf32, #tpu.memory_space<vmem>>, vector<1x1x8x128xf32>
    %204 = vector.shape_cast %203 : vector<1x1x8x128xf32> to vector<8x128xf32>
    %205 = vector.shape_cast %202 : vector<8x128xf32> to vector<1x1x8x128xf32>
    tpu.vector_store %arg6[%c0_130, %c0_131, %c88_132, %c0_133], %205 {strides = array<i32>} : memref<1x1x96x128xf32, #tpu.memory_space<vmem>>, vector<1x1x8x128xf32>,
    return
  }
  func.func @transform_0(%arg0: i32, %arg1: i32, %arg2: i32) -> (i32, i32, i32) {
    %c1_i32 = arith.constant 1 : i32
    %0 = arith.muli %arg1, %c1_i32 : i32
    %1 = arith.addi %0, %arg2 : i32
    %c0_i32 = arith.constant 0 : i32
    %c0_i32_0 = arith.constant 0 : i32
    return %arg0, %1, %c0_i32 : i32, i32, i32
  }
  func.func @transform_1(%arg0: i32, %arg1: i32, %arg2: i32) -> (i32, i32, i32, i32) {
    %c1_i32 = arith.constant 1 : i32
    %0 = arith.muli %arg1, %c1_i32 : i32
    %1 = arith.addi %0, %arg2 : i32
    %c0_i32 = arith.constant 0 : i32
    %c0_i32_0 = arith.constant 0 : i32
    %c0_i32_1 = arith.constant 0 : i32
    return %arg0, %c0_i32, %1, %c0_i32_0 : i32, i32, i32, i32
  }
  func.func @transform_2(%arg0: i32, %arg1: i32, %arg2: i32) -> (i32, i32, i32, i32) {
    %c0_i32 = arith.constant 0 : i32
    %c0_i32_0 = arith.constant 0 : i32
    %c0_i32_1 = arith.constant 0 : i32
    return %arg0, %arg1, %c0_i32, %c0_i32_0 : i32, i32, i32, i32
  }
  func.func @transform_3(%arg0: i32, %arg1: i32, %arg2: i32) -> (i32, i32, i32, i32) {
    %c0_i32 = arith.constant 0 : i32
    %c0_i32_0 = arith.constant 0 : i32
    %c0_i32_1 = arith.constant 0 : i32
    return %arg0, %arg1, %c0_i32, %c0_i32_0 : i32, i32, i32, i32
  }
}

</mosaic_0001>

<bundles_post_ra>
// kernel: tpu_custom_call.1
= control target key start
LH: loop header
LB: loop body
LE: loop exit
PB: predicated region body
PF: predicated region fallthrough
CT: control target
= control target key end

     0   :  { %9 = vsyncpa [#allocation3], 0  ;;  %s1201_s0 = inlined_call_operand.hbm [shape: s32[2,8,128], index: 0, kind: input, shape index: {}]   ;;  %s1202_s1 = inlined_call_operand.hbm [shape: f32[2,4,8,128], index: 1, kind: input, shape index: {}]   ;;  %s1203_s2 = inlined_call_operand.hbm [shape: f32[2,1,16,128], index: 2, kind: output, shape index: {0}]   ;;  %s1204_s3 = inlined_call_operand.hbm [shape: f32[2,1,96,128], index: 3, kind: output, shape index: {1}]  }
   0x1   :  { %11 = vsyncpa [#allocation3 + $0x1], 0 }
   0x2   :  { %12 = vsyncpa [#allocation6], 0 }
   0x3   :  { %14 = vsyncpa [#allocation6 + $0x1], 0 }
   0x4   :  { %15 = vsyncpa [#allocation4], 0 }
   0x5   :  { %17 = vsyncpa [#allocation4 + $0x1], 0 }
   0x6   :  { %18 = vsyncpa [#allocation9], 0 }
   0x7   :  { %20 = vsyncpa [#allocation9 + $0x1], 0  ;;  %s960_s12 = smov 0   ;;  %s962_s13 = smov 0  }
   0x8   :  { %s964_s14 = smov 0   ;;  %s966_s15 = smov 0  }
   0x9   :  { %s968_s16 = smov 0   ;;  %s970_s17 = smov 0  }
   0xa LB: > { %s636_s18 = sadd.s32 4294967295, %s933_s17   ;;  %s637_s19 = sadd.s32 4294967294, %s933_s17   ;;  %s933_s17 = sphi %s970_s17, %s26_s17   ;;  %s929_s16 = sphi %s968_s16, %s1214_s16   ;;  %s925_s15 = sphi %s966_s15, %s1213_s15   ;;  %s921_s14 = sphi %s964_s14, %s1212_s14   ;;  %s917_s13 = sphi %s962_s13, %s1211_s13   ;;  %s913_s12 = sphi %s960_s12, %s1210_s12  }
   0xb   : > { %s45_s20 = sadd.s32 1, %s929_s16  ;;  %s56_s21 = sadd.s32 1, %s921_s14 }
   0xc   : > { %p47_p0 = scmp.ge.s32.totalorder %s45_s20, 2  ;;  %p63_p1 = scmp.ne.s32.totalorder %s921_s14, %s917_s13 }
   0xd   : > { %p64_p2 = scmp.eq.s32.totalorder %s933_s17, 0  ;;  %p69_p3 = scmp.ne.s32.totalorder %s917_s13, %s913_s12 }
   0xe   : > { %s1216_s20 = smov (%p47_p0, %s45_s20), 0  ;;  %p70_p5 = scmp.eq.s32.totalorder %s636_s18, 0 }
   0xf   : > { %p1001_p4 = por %p64_p2, %p63_p1  ;;  %s51_s23 = ssub.s32 %s929_s16, %s1216_s20 }
  0x10   : > { %p125_p6 = scmp.eq.s32.totalorder %s636_s18, 1  ;;  %p54_p7 = scmp.eq.s32.totalorder %s51_s23, 0 }
  0x11   : > { %p1007_p8 = por %p70_p5, %p69_p3  ;;  %p131_p10 = scmp.eq.s32.totalorder %s637_s19, 1 }
  0x12   : > { %p1011_p9 = por %p125_p6, %p63_p1  ;;  %p639_p12 = scmp.ge.s32.totalorder %s933_s17, 2 }
  0x13   : > { %s1016_s26 = scalar_select %p54_p7, %s921_s14, %s56_s21  }
  0x14   : > { %p1018_p11 = por %p131_p10, %p69_p3  ;;  %p688_p13 = scmp.lt.s32.totalorder %s933_s17, 2 }
  0x15   : > { %s1025_s28 = sand.u32 1, %s921_s14   ;;  %s641_s30 = sshll.u32 %s929_s16, 3 }
  0x16   : > { %s640_s29 = sshll.u32 %s1025_s28, 3  ;;  %s189_s6 = scalar_lea.hbm %s1201_s0, %s641_s30 }
  0x17   : > { %s183_s7 = scalar_lea.vmem [#allocation2], %s640_s29  ;;  %s191_s9 = sshll.u32 %s189_s6, 4  ;;  %s192_s9 = int_to_ptr.hbm [resolvable:$true] %s191_s9 }
  0x18   : > { %s193_s8 = sshll.u32 %s183_s7, 4  ;;  %p1034_p0 = pnand %p688_p13, %p1001_p4  ;;  %s194_s8 = int_to_ptr.vmem [resolvable:$true] %s193_s8 }
  0x19   : > { %p645_p1 = scmp.ge.s32.totalorder %s933_s17, 1  ;;  %p222_p2 = scmp.lt.s32.totalorder %s933_s17, 3 }
  0x1a   : > { %s180_s11 = scalar_lea.sflag [#allocation3], %s1025_s28  ;;  %s642_s18 = sshll.u32 %s1025_s28, 5 }
  0x1b   : > { %677 = dma.hbm_to_vmem [thread:$0]  (!%p1034_p0), %s192_s9, 128, %s194_s8, %s180_s11  }
  0x1c   : > { %p223_p3 = pnand %p645_p1, %p222_p2  ;;  %s662_s19 = sshll.u32 %s929_s16, 5 }
  0x1d   : > { %s211_s29 = scalar_lea.hbm %s1202_s1, %s662_s19  ;;  %s204_s30 = scalar_lea.vmem [#allocation5], %s642_s18 }
  0x1e   : > { %s214_s22 = sshll.u32 %s204_s30, 4  ;;  %s212_s4 = sshll.u32 %s211_s29, 4  ;;  %s215_s22 = int_to_ptr.vmem [resolvable:$true] %s214_s22  ;;  %s213_s4 = int_to_ptr.hbm [resolvable:$true] %s212_s4 }
  0x1f   : > { %s201_s5 = scalar_lea.sflag [#allocation6], %s1025_s28  ;;  %s935_s6 = smov 128  }
  0x20   : > { %s936_s7 = smov 8   ;;  %226 = sbr.rel (%p223_p3) target bundleno = 103 (0x67), region = 28 }
  0x21   : > { %680 = dma.hbm_to_vmem [thread:$0]  (!%p1034_p0), %s213_s4, 512, %s215_s22, %s201_s5, %s935_s6, %s935_s6, %s936_s7  }
  0x22   : > { %s1052_s8 = sand.u32 (!%p223_p3), 1, %s917_s13  }
  0x23   : > { %s646_s9 = sshll.u32 (!%p223_p3), %s1052_s8, 3  ;;  %s229_s11 = scalar_lea.sflag (!%p223_p3), [#allocation3], %s1052_s8 }
  0x24   : > { %s232_s19 = scalar_lea.vmem (!%p223_p3), [#allocation2], %s646_s9 }
  0x25   : > { %896 = dma.done.wait (%p1007_p8), %s229_s11, 128  }
  0x26   : > { %898 = vsyncadd (%p1007_p8), %s229_s11, 4294967168  ;;  %s647_s28 = sshll.u32 %s1052_s8, 5  ;;  %s239_s10 = scalar_lea.sflag [#allocation6], %s1052_s8 }
  0x27   : > { %s242_s18 = scalar_lea.vmem [#allocation5], %s647_s28 }
  0x28   : > { %900 = dma.done.wait (%p1007_p8), %s239_s10, 512  }
  0x29   : > { %902 = vsyncadd (%p1007_p8), %s239_s10, 4294966784  ;;  %v298_v0 = vld [vmem:[%s242_s18] sm:$0xff]  ;;  %v649_v1 = vld [vmem:[%s242_s18 + $0x8] sm:$0xff]  ;;  %s664_s24 = smul.u32 96, %s1052_s8  ;;  %v937_v23 = vmov 0.0   ;;  %s648_s23 = sshll.u32 %s1052_s8, 4 }
  0x2a   : > { %v650_v2 = vld [vmem:[%s242_s18 + $0x10] sm:$0xff]  ;;  %v308_v3 = vmax.f32 %v298_v0, %v649_v1  ;;  %v651_v4 = vld [vmem:[%s242_s18 + $0x18] sm:$0xff]  ;;  %s663_s29 = sshll.u32 %s925_s15, 4  ;;  %s268_s5 = scalar_lea.vmem [#allocation7], %s648_s23 }
  0x2b   : > { %v1066_v15 = vld [vmem:[%s232_s19] sm:$0xff]  ;;  %s1099_s21 = scalar_lea.vmem [#allocation8], %s664_s24  ;;  %s459_s4 = scalar_lea.hbm %s1203_s2, %s663_s29 }
  0x2c   : > { %v309_v5 = vmax.f32 %v308_v3, %v650_v2  ;;  %vm316_vm0 = vcmp.eq.s32.totalorder %v1066_v15, 0  ;;  %vm324_vm1 = vcmp.eq.s32.totalorder %v1066_v15, 1  ;;  %vm332_vm2 = vcmp.eq.s32.totalorder %v1066_v15, 2  ;;  %s460_s6 = sshll.u32 %s268_s5, 4  ;;  %s462_s7 = sshll.u32 %s459_s4, 4  ;;  %s461_s6 = int_to_ptr.vmem [resolvable:$true] %s460_s6  ;;  %s463_s7 = int_to_ptr.hbm [resolvable:$true] %s462_s7 }
  0x2d   : > { %vm340_vm3 = vcmp.eq.s32.totalorder %v1066_v15, 3  ;;  %v652_v24 = vsel %vm316_vm0, 1.0, %v937_v23  ;;  %v653_v25 = vsel %vm324_vm1, 1.0, %v937_v23  ;;  %v654_v26 = vsel %vm332_vm2, 1.0, %v937_v23  ;;  %s441_s9 = scalar_lea.sflag [#allocation4], %s1052_s8  ;;  %s829_s11 = sshra.s32 %s463_s7, 4  ;;  %s830_s11 = int_to_ptr.hbm [resolvable:$true] %s829_s11 }
  0x2e   : > { %v310_v6 = vmax.f32 %v309_v5, %v651_v4  ;;  %v655_v27 = vsel %vm340_vm3, 1.0, %v937_v23  ;;  %430 = vst [vmem:[%s1099_s21 + $0x40] sm:$0xff] %v652_v24  ;;  %vm297_vm4 = vcmp.ne.s32.totalorder %v1066_v15, 255  ;;  %s831_s19 = scalar_lea.hbm %s830_s11, 16  ;;  %s835_s18 = scalar_lea.hbm %s1203_s2, 32 }
  0x2f   : > { %433 = vst [vmem:[%s1099_s21 + $0x48] sm:$0xff] %v653_v25  ;;  %p832_p4 = scmp.ne.s32.totalorder %s830_s11, %s831_s19  ;;  %p836_p7 = scmp.lt.s32.totalorder %s830_s11, %s1203_s2 }
  0x30   : > { %v311_v7 = vsub.f32 %v298_v0, %v310_v6  ;;  %v319_v8 = vsub.f32 %v649_v1, %v310_v6  ;;  %v327_v9 = vsub.f32 %v650_v2, %v310_v6  ;;  %v335_v10 = vsub.f32 %v651_v4, %v310_v6  ;;  %436 = vst [vmem:[%s1099_s21 + $0x50] sm:$0xff] %v654_v26  ;;  %p837_p8 = scmp.lt.s32.totalorder %s835_s18, %s831_s19 }
  0x31   : > { %439 = vst [vmem:[%s1099_s21 + $0x58] sm:$0xff] %v655_v27  ;;  %p833_p5 = pnand %p832_p4, %p1011_p9 }
  0x32   : > { %v312_v11 = vmul.f32 1.442695, %v311_v7  ;;  %v320_v12 = vmul.f32 1.442695, %v319_v8  ;;  %v328_v13 = vmul.f32 1.442695, %v327_v9  ;;  %v323_v32 = vadd.f32 %v319_v8, %v311_v7  ;;  %p838_p10 = por %p837_p8, %p836_p7 }
  0x33   : > { %v336_v14 = vmul.f32 1.442695, %v335_v10  ;;  %v317_v19 = vsel %vm316_vm0, %v311_v7, 0.0  ;;  %v325_v21 = vsel %vm324_vm1, %v319_v8, 0.0  ;;  %v333_v30 = vsel %vm332_vm2, %v327_v9, 0.0  ;;  %p834_p6 = pneg %p833_p5 }
  0x34   : > { %743 = vpow2.f32 %v312_v11  ;;  %v326_v29 = vadd.f32 %v325_v21, %v317_v19  ;;  %v341_v34 = vsel %vm340_vm3, %v335_v10, 0.0  ;;  %v331_v35 = vadd.f32 %v327_v9, %v323_v32 }
  0x35   : > { %745 = vpow2.f32 %v320_v12  ;;  %p839_p13 = pnand %p838_p10, %p834_p6 }
  0x36   : > { %747 = vpow2.f32 %v328_v13  ;;  %v334_v33 = vadd.f32 %v333_v30, %v326_v29  ;;  %v339_v40 = vadd.f32 %v335_v10, %v331_v35 }
  0x37   : > { %749 = vpow2.f32 %v336_v14 }
  0x38   : > { %v342_v36 = vadd.f32 %v341_v34, %v334_v33 }
  0x3a   : > { %v1071_v16 = vpop.eup %743 }
  0x3b   : > { %v1073_v17 = vpop.eup %745 }
  0x3c   : > { %v1076_v18 = vpop.eup %747  ;;  %v322_v20 = vadd.f32 %v1073_v17, %v1071_v16 }
  0x3d   : > { %v1085_v22 = vpop.eup %749 }
  0x3e   : > { %v330_v28 = vadd.f32 %v1076_v18, %v322_v20 }
  0x40   : > { %v338_v31 = vadd.f32 %v1085_v22, %v330_v28 }
  0x42   : > { %751 = vlog2.f32 %v338_v31  ;;  %v363_v44 = vand.u32 2147483648, %v338_v31  ;;  %vm357_vm5 = vweird.f32 %v338_v31  ;;  %v361_v46 = vand.u32 2147483647, %v338_v31 }
  0x43   : > { %753 = vrcp.f32 %v338_v31 }
  0x44   : > { %v364_v51 = vor.u32 1.1754944e-38, %v363_v44  ;;  %vm362_vm8 = vcmp.eq.f32.partialorder %v361_v46, 8.507059e+37 }
  0x48   : > { %v752_v37 = vpop.eup %751 }
  0x49   : > { %v754_v38 = vpop.eup %753  ;;  %v344_v39 = vmul.f32 0.6931472, %v752_v37 }
  0x4a   : > { %v353_v41 = vmul.f32 %v754_v38, %v338_v31  ;;  %vm358_vm6 = vweird.f32 %v754_v38 }
  0x4b   : > { %v345_v42 = vsub.f32 %v344_v39, %v342_v36  ;;  %v348_v43 = vmul.f32 4.0, %v344_v39  ;;  %vm359_vm7 = vmor %vm357_vm5, %vm358_vm6 }
  0x4c   : > { %v354_v45 = vsub.f32 1.0, %v353_v41 }
  0x4d   : > { %v346_v47 = vsel %vm297_vm4, %v345_v42, 0.0  ;;  %v349_v48 = vsub.f32 %v348_v43, %v339_v40 }
  0x4e   : > { %v355_v49 = vmul.f32 %v754_v38, %v354_v45  ;;  %400 = vst [vmem:[%s268_s5] sm:$0xff] %v346_v47 }
  0x4f   : > { %v350_v50 = vsel %vm297_vm4, %v349_v48, 0.0 }
  0x50   : > { %v356_v52 = vadd.f32 %v754_v38, %v355_v49  ;;  %403 = vst [vmem:[%s268_s5 + $0x8] sm:$0xff] %v350_v50 }
  0x52   : > { %v360_v53 = vsel %vm359_vm7, %v754_v38, %v356_v52 }
  0x53   : > { %v365_v54 = vsel %vm362_vm8, %v364_v51, %v360_v53 }
  0x54   : > { %842 = shalt.err (!%p839_p13)
}
  0x55   : > { %s938_s29 = smov 128   ;;  %s939_s30 = smov 8   ;;  %v366_v55 = vmul.f32 %v1071_v16, %v365_v54  ;;  %v374_v56 = vmul.f32 %v1073_v17, %v365_v54  ;;  %v382_v57 = vmul.f32 %v1076_v18, %v365_v54  ;;  %v390_v58 = vmul.f32 %v1085_v22, %v365_v54 }
  0x56   : > { %670 = dma.vmem_to_hbm [thread:$0]  (%p1011_p9), %s461_s6, 256, %s463_s7, %s441_s9, %s938_s29, %s938_s29, %s939_s30  }
  0x57   : > { %s665_s22 = smul.u32 96, %s925_s15  ;;  %v367_v59 = vsel %vm316_vm0, %v366_v55, 0.0  ;;  %v375_v60 = vsel %vm324_vm1, %v374_v56, 0.0  ;;  %v383_v61 = vsel %vm332_vm2, %v382_v57, 0.0  ;;  %v391_v62 = vsel %vm340_vm3, %v390_v58, 0.0  ;;  %s479_s6 = sshll.u32 %s1099_s21, 4  ;;  %s480_s6 = int_to_ptr.vmem [resolvable:$true] %s479_s6 }
  0x58   : > { %v369_v63 = vsel %vm297_vm4, %v366_v55, 0.0  ;;  %v377_v0 = vsel %vm297_vm4, %v374_v56, 0.0  ;;  %v385_v1 = vsel %vm297_vm4, %v382_v57, 0.0  ;;  %406 = vst [vmem:[%s1099_s21] sm:$0xff] %v367_v59  ;;  %v393_v2 = vsel %vm297_vm4, %v390_v58, 0.0  ;;  %s446_s9 = scalar_lea.sflag [#allocation9], %s1052_s8  ;;  %s863_s18 = scalar_lea.hbm %s1204_s3, 192 }
  0x59   : > { %s478_s5 = scalar_lea.hbm %s1204_s3, %s665_s22  ;;  %409 = vst [vmem:[%s1099_s21 + $0x8] sm:$0xff] %v375_v60 }
  0x5a   : > { %412 = vst [vmem:[%s1099_s21 + $0x10] sm:$0xff] %v383_v61  ;;  %s481_s7 = sshll.u32 %s478_s5, 4  ;;  %s482_s7 = int_to_ptr.hbm [resolvable:$true] %s481_s7 }
  0x5b   : > { %415 = vst [vmem:[%s1099_s21 + $0x18] sm:$0xff] %v391_v62  ;;  %s857_s11 = sshra.s32 %s482_s7, 4  ;;  %s858_s11 = int_to_ptr.hbm [resolvable:$true] %s857_s11 }
  0x5c   : > { %418 = vst [vmem:[%s1099_s21 + $0x20] sm:$0xff] %v369_v63  ;;  %s859_s19 = scalar_lea.hbm %s858_s11, 96  ;;  %p864_p3 = scmp.lt.s32.totalorder %s858_s11, %s1204_s3 }
  0x5d   : > { %421 = vst [vmem:[%s1099_s21 + $0x28] sm:$0xff] %v377_v0  ;;  %p860_p0 = scmp.ne.s32.totalorder %s858_s11, %s859_s19  ;;  %p865_p4 = scmp.lt.s32.totalorder %s863_s18, %s859_s19 }
  0x5e   : > { %424 = vst [vmem:[%s1099_s21 + $0x30] sm:$0xff] %v385_v1 }
  0x5f   : > { %427 = vst [vmem:[%s1099_s21 + $0x38] sm:$0xff] %v393_v2  ;;  %p861_p1 = pnand %p860_p0, %p1011_p9  ;;  %p866_p5 = por %p865_p4, %p864_p3 }
  0x61   : > { %p862_p2 = pneg %p861_p1 }
  0x63   : > { %p867_p6 = pnand %p866_p5, %p862_p2 }
  0x65   : > { %870 = shalt.err (!%p867_p6)
}
  0x66   : > { %671 = dma.vmem_to_hbm [thread:$0]  (%p1011_p9), %s480_s6, 1536, %s482_s7, %s446_s9, %s938_s29, %s938_s29, %s939_s30  }
  0x67 PF: > { %s496_s8 = sand.u32 1, %s913_s12   ;;  %p682_p7 = pnand %p639_p12, %p1018_p11 }
  0x68   : > { %s497_s21 = scalar_lea.sflag [#allocation4], %s496_s8 }
  0x69   : > { %p683_p8 = pneg %p682_p7 }
  0x6b   : > { %904 = dma.done.wait (%p683_p8), %s497_s21, 256  }
  0x6c   : > { %906 = vsyncadd (%p683_p8), %s497_s21, 4294967040  ;;  %s507_s22 = scalar_lea.sflag [#allocation9], %s496_s8 }
  0x6d   : > { %908 = dma.done.wait (%p683_p8), %s507_s22, 1536  }
  0x6e   : > { %910 = vsyncadd (%p683_p8), %s507_s22, 4294965760  ;;  %s26_s17 = sadd.s32 1, %s933_s17   ;;  %s1210_s12 = smov %s917_s13 }
  0x6f   : > { %p23_p10 = scmp.ge.s32.totalorder %s26_s17, 4   ;;  %s1211_s13 = smov %s921_s14 }
  0x70   : > { %s1212_s14 = smov %s1016_s26  ;;  %s1213_s15 = smov %s929_s16 }
  0x71   : > { %s1214_s16 = smov %s1216_s20  ;;  %25 = sbr.rel (!%p23_p10) target bundleno = 10 (0xa), region = 110 }
  0x76   :  { %513 = vsyncpa [#allocation3], 1 }
  0x77   :  { %515 = vsyncpa [#allocation3 + $0x1], 1 }
  0x78   :  { %516 = vsyncpa [#allocation6], 1 }
  0x79   :  { %518 = vsyncpa [#allocation6 + $0x1], 1 }
  0x7a   :  { %519 = vsyncpa [#allocation4], 1 }
  0x7b   :  { %521 = vsyncpa [#allocation4 + $0x1], 1 }
  0x7c   :  { %522 = vsyncpa [#allocation9], 1 }
  0x7d   :  { %524 = vsyncpa [#allocation9 + $0x1], 1 }

</bundles_post_ra>
